<compile_context>
chip_gen: v7x
topology: tpu7x:2x2x1
jax: 0.10.0
libtpu: 0.0.40
codegen_flags: <defaults>
</compile_context>

<pallas_src>
import functools

import jax
import jax.numpy as jnp
from jax.experimental import pallas as pl
from jax.experimental.pallas import tpu as pltpu

LANE = 128
SUBLANE = 8
# Conservative budget: fits v7x's 64 MiB per-TC physical VMEM with headroom,
# and is far below v5e/v6e's 128 MiB.
_VMEM_BUDGET = 40 << 20


def _round_up(n: int, m: int) -> int:
    return ((n + m - 1) // m) * m


def _pick_tile_b(b8: int, cap: int) -> int:
    """Largest multiple-of-8 divisor of b8 that is <= cap.

    Prefers >= 2 grid steps whenever b8 >= 16 so dimension_semantics=
    ("parallel",) actually shards the batch across v7x's two TensorCores
    (no-op on single-TC v5e/v6e).  Divisor choice avoids padding x beyond the
    sublane requirement.
    """
    cap = max(SUBLANE, (cap // SUBLANE) * SUBLANE)
    target = min(cap, b8)
    if b8 >= 2 * SUBLANE:
        target = min(target, _round_up((b8 + 1) // 2, SUBLANE))  # >= 2 steps
    for cand in range(target, SUBLANE - 1, -SUBLANE):
        if b8 % cand == 0:
            return cand
    return SUBLANE


def _resident_spec(a):
    """Full-shape block, constant index_map -> VMEM-resident across the grid.

    Constant-index blocks don't need double buffering; single-buffering them
    (pl.Buffered(1)) halves their VMEM footprint.
    """
    idx = lambda i: (0,) * a.ndim
    try:
        return pl.BlockSpec(a.shape, idx, pipeline_mode=pl.Buffered(1))
    except (TypeError, AttributeError):  # older jax without pipeline_mode
        return pl.BlockSpec(a.shape, idx)


def mlp_kernel(x_ref, w1_ref, b1_ref, w2_ref, b2_ref, w3_ref, b3_ref, o_ref):
    """Fused fc1 -> ReLU -> fc2 -> ReLU -> fc3 on one batch tile, all in VMEM.

    Matmul operands use the weight dtype (bf16 by default -> native MXU rate
    on v5e/v6e/v7x); accumulation, bias add and ReLU stay f32.  The ReLU
    output is cast to the operand dtype in the same VPU pass, so the f32
    intermediate is never re-materialized and re-cast at the next dot.
    """
    mm_dt = w1_ref.dtype
    x = x_ref[...].astype(mm_dt)

    h1 = jnp.dot(x, w1_ref[...], preferred_element_type=jnp.float32) + b1_ref[...]
    h1 = jnp.maximum(h1, 0.0).astype(mm_dt)          # ReLU + cast fused

    h2 = jnp.dot(h1, w2_ref[...], preferred_element_type=jnp.float32) + b2_ref[...]
    h2 = jnp.maximum(h2, 0.0).astype(mm_dt)          # ReLU + cast fused

    out = jnp.dot(h2, w3_ref[...], preferred_element_type=jnp.float32) + b3_ref[...]
    o_ref[...] = out.astype(o_ref.dtype)


def prepare_mlp_params(params, matmul_dtype=jnp.bfloat16):
    """One-time parameter prep.  Call ONCE outside the inference loop.

    * Pads the final projection (w3/b3) to a multiple of 128 output lanes so
      the kernel's output store is an unmasked, lane-dense vst.
    * Casts weights to `matmul_dtype` (default bf16: native MXU rate on all of
      v5e/v6e/v7x).  Pass matmul_dtype=None to keep f32 matmuls as a
      debug/reference path.  Biases stay f32 (f32 bias add / ReLU).

    Note: the bf16 path double-rounds activations between layers (x, h1, h2
    are each cast to bf16 before the next matmul); accumulation is f32.

    Returns (prepared_params, out_dim).
    """
    w1, b1, w2, b2, w3, b3 = (params[k] for k in ("w1", "b1", "w2", "b2", "w3", "b3"))
    out_dim = w3.shape[1]
    out_pad = _round_up(out_dim, LANE)
    if out_pad != out_dim:
        w3 = jnp.pad(w3, ((0, 0), (0, out_pad - out_dim)))
        b3 = jnp.pad(b3, ((0, 0), (0, out_pad - out_dim)))
    if matmul_dtype is not None:
        w1 = w1.astype(matmul_dtype)
        w2 = w2.astype(matmul_dtype)
        w3 = w3.astype(matmul_dtype)
    prepared = {"w1": w1, "b1": b1, "w2": w2, "b2": b2, "w3": w3, "b3": b3}
    return prepared, out_dim


@functools.partial(jax.jit, static_argnames=("out_dim", "tile_b", "out_dtype"))
def mlp_forward(x, params, *, out_dim=None, tile_b=1024, out_dtype=None):
    """x: (B, input_dim).  params: output of prepare_mlp_params (preferred) or
    raw init_mlp_params (falls back to per-call padding of w3/b3).

    out_dim:   true output width (needed when params are pre-padded).
    tile_b:    batch tile cap; sweep 512-2048 for large batches.
    out_dtype: None -> x.dtype; jnp.bfloat16 halves the padded writeback.
    """
    w1, b1, w2, b2, w3, b3 = (params[k] for k in ("w1", "b1", "w2", "b2", "w3", "b3"))
    B, in_dim = x.shape
    hidden = w1.shape[1]
    if out_dim is None:
        out_dim = w3.shape[1]

    # Fallback for un-prepared params (prefer prepare_mlp_params: one-time).
    out_pad = _round_up(w3.shape[1], LANE)
    if out_pad != w3.shape[1]:
        w3 = jnp.pad(w3, ((0, 0), (0, out_pad - w3.shape[1])))
        b3 = jnp.pad(b3, ((0, 0), (0, out_pad - b3.shape[1])))

    out_dtype = x.dtype if out_dtype is None else out_dtype
    out_itemsize = jnp.dtype(out_dtype).itemsize
    mm_itemsize = jnp.dtype(w1.dtype).itemsize

    # --- VMEM budget: resident weights/biases (single-buffered) + per-row cost
    # of double-buffered x/out tiles, f32 h1/h2 temporaries and operand casts.
    weight_bytes = sum(int(a.size) * a.dtype.itemsize
                       for a in (w1, w2, w3, b1, b2, b3))
    per_row = (2 * in_dim * x.dtype.itemsize          # x tile, double-buffered
               + 2 * out_pad * out_itemsize           # out tile, double-buffered
               + 2 * hidden * 4                       # f32 h1/h2 temporaries
               + (in_dim + 2 * hidden) * mm_itemsize)  # cast copies
    cap_vmem = max(SUBLANE,
                   ((_VMEM_BUDGET - weight_bytes) // per_row) // SUBLANE * SUBLANE)

    # --- Batch tiling: only pad B up to the sublane granule; tb divides b8.
    b8 = _round_up(B, SUBLANE)
    tb = _pick_tile_b(b8, min(tile_b, cap_vmem))
    xp = x if b8 == B else jnp.pad(x, ((0, b8 - B), (0, 0)))
    grid = (b8 // tb,)

    vmem_need = weight_bytes + tb * per_row + (2 << 20)
    vmem_limit = int(min(max(2 * vmem_need, 32 << 20), 56 << 20))

    flops = 2 * b8 * (in_dim * hidden + hidden * hidden + hidden * out_pad)
    bytes_accessed = int(xp.size) * xp.dtype.itemsize + weight_bytes \
        + b8 * out_pad * out_itemsize

    out = pl.pallas_call(
        mlp_kernel,
        out_shape=jax.ShapeDtypeStruct((b8, out_pad), out_dtype),
        grid_spec=pltpu.PrefetchScalarGridSpec(
            num_scalar_prefetch=0,
            grid=grid,
            in_specs=[
                pl.BlockSpec((tb, in_dim), lambda i: (i, 0)),  # x: batch-tiled
                _resident_spec(w1), _resident_spec(b1),
                _resident_spec(w2), _resident_spec(b2),
                _resident_spec(w3), _resident_spec(b3),
            ],
            out_specs=pl.BlockSpec((tb, out_pad), lambda i: (i, 0)),
        ),
        compiler_params=pltpu.CompilerParams(
            dimension_semantics=("parallel",),   # shard batch tiles across v7x TCs
            vmem_limit_bytes=vmem_limit,
        ),
        cost_estimate=pl.CostEstimate(
            flops=flops, transcendentals=0, bytes_accessed=bytes_accessed),
    )(xp, w1, b1, w2, b2, w3, b3)

    return out[:B, :out_dim]


def init_mlp_params(key, input_dim, output_dim, hidden_dim=256, dtype=jnp.float32):
    """Deterministic init mimicking PyTorch nn.Linear default U(-1/sqrt(fan_in), ...)."""
    ks = jax.random.split(key, 6)

    def linear(kw, kb, fan_in, fan_out):
        bound = 1.0 / jnp.sqrt(jnp.asarray(fan_in, dtype))
        w = jax.random.uniform(kw, (fan_in, fan_out), dtype, -bound, bound)
        b = jax.random.uniform(kb, (1, fan_out), dtype, -bound, bound)
        return w, b

    w1, b1 = linear(ks[0], ks[1], input_dim, hidden_dim)
    w2, b2 = linear(ks[2], ks[3], hidden_dim, hidden_dim)
    w3, b3 = linear(ks[4], ks[5], hidden_dim, output_dim)
    return {"w1": w1, "b1": b1, "w2": w2, "b2": b2, "w3": w3, "b3": b3}


def mlp_reference(x, p):
    h1 = jnp.maximum(x @ p["w1"] + p["b1"], 0.0)
    h2 = jnp.maximum(h1 @ p["w2"] + p["b2"], 0.0)
    return h2 @ p["w3"] + p["b3"]


if __name__ == "__main__":
    key = jax.random.PRNGKey(0)
    k_x, k_p = jax.random.split(key)

    # Small shapes consistent with the module; batch=16 -> a 2-step grid so the
    # "parallel" batch axis is exercised.
    batch, input_dim, output_dim, hidden_dim = 16, 16, 4, 256
    x = jax.random.normal(k_x, (batch, input_dim), dtype=jnp.float32)
    params = init_mlp_params(k_p, input_dim, output_dim, hidden_dim)
    ref = mlp_reference(x, params)

    # Default path: bf16 MXU operands (native rate on v5e/v6e/v7x), f32 accum.
    prep_bf16, out_dim = prepare_mlp_params(params)          # one-time prep
    out = jax.block_until_ready(mlp_forward(x, prep_bf16, out_dim=out_dim))
    assert out.shape == (batch, output_dim)
    assert jnp.allclose(out, ref, atol=1e-1, rtol=1e-1)

    # f32 debug/reference path: matches the PyTorch module tightly.
    prep_f32, _ = prepare_mlp_params(params, matmul_dtype=None)
    out_f32 = jax.block_until_ready(mlp_forward(x, prep_f32, out_dim=out_dim))
    assert out_f32.shape == (batch, output_dim)
    assert jnp.allclose(out_f32, ref, atol=1e-4, rtol=1e-4)

    # bf16 output variant: halves the lane-padded writeback for bf16 consumers.
    out_bf16 = jax.block_until_ready(
        mlp_forward(x, prep_bf16, out_dim=out_dim, out_dtype=jnp.bfloat16))
    assert out_bf16.shape == (batch, output_dim) and out_bf16.dtype == jnp.bfloat16

    print("KERNEL_OK")
</pallas_src>

<mosaic_0001>
module attributes {stable_mosaic.version = 11 : i64} {
  func.func @mlp_kernel(%arg0: i32, %arg1: memref<8x16xf32, #tpu.memory_space<vmem>>, %arg2: memref<16x256xbf16, #tpu.memory_space<vmem>>, %arg3: memref<1x256xf32, #tpu.memory_space<vmem>>, %arg4: memref<256x256xbf16, #tpu.memory_space<vmem>>, %arg5: memref<1x256xf32, #tpu.memory_space<vmem>>, %arg6: memref<256x128xbf16, #tpu.memory_space<vmem>>, %arg7: memref<1x128xf32, #tpu.memory_space<vmem>>, %arg8: memref<8x128xf32, #tpu.memory_space<vmem>>) attributes {dimension_semantics = [#tpu.dimension_semantics<parallel>], iteration_bounds = array<i64: 2>, scalar_prefetch = 0 : i64, scratch_operands = 0 : i64, tpu.core_type = #tpu.core_type<tc>, window_params = [{transform_indices = @transform_0, window_bounds = array<i64: 8, 16>}, {pipeline_mode = #tpu.pipeline_mode<synchronous>, transform_indices = @transform_1, window_bounds = array<i64: 16, 256>}, {pipeline_mode = #tpu.pipeline_mode<synchronous>, transform_indices = @transform_2, window_bounds = array<i64: 1, 256>}, {pipeline_mode = #tpu.pipeline_mode<synchronous>, transform_indices = @transform_3, window_bounds = array<i64: 256, 256>}, {pipeline_mode = #tpu.pipeline_mode<synchronous>, transform_indices = @transform_4, window_bounds = array<i64: 1, 256>}, {pipeline_mode = #tpu.pipeline_mode<synchronous>, transform_indices = @transform_5, window_bounds = array<i64: 256, 128>}, {pipeline_mode = #tpu.pipeline_mode<synchronous>, transform_indices = @transform_6, window_bounds = array<i64: 1, 128>}, {transform_indices = @transform_7, window_bounds = array<i64: 8, 128>}]} {
    %c0 = arith.constant 0 : index
    %c0_0 = arith.constant 0 : index
    %0 = vector.load %arg1[%c0, %c0_0] : memref<8x16xf32, #tpu.memory_space<vmem>>, vector<8x16xf32>
    %1 = arith.truncf %0 : vector<8x16xf32> to vector<8x16xbf16>
    %c0_1 = arith.constant 0 : index
    %c0_2 = arith.constant 0 : index
    %2 = vector.load %arg2[%c0_1, %c0_2] : memref<16x256xbf16, #tpu.memory_space<vmem>>, vector<16x256xbf16>
    %cst = arith.constant dense<0.000000e+00> : vector<8x256xf32>
    %3 = tpu.matmul %1, %2, %cst {dimension_numbers = #tpu.dot_dimension_numbers<[1], [0], [0], [1], [0, 0, 1, 1], [], []>} : vector<8x16xbf16>, vector<16x256xbf16>, vector<8x256xf32> -> vector<8x256xf32>
    %c0_3 = arith.constant 0 : index
    %c0_4 = arith.constant 0 : index
    %4 = vector.load %arg3[%c0_3, %c0_4] : memref<1x256xf32, #tpu.memory_space<vmem>>, vector<1x256xf32>
    %5 = vector.broadcast %4 : vector<1x256xf32> to vector<8x256xf32>
    %6 = arith.addf %3, %5 : vector<8x256xf32>
    %cst_5 = arith.constant 0.000000e+00 : f32
    %7 = vector.broadcast %cst_5 : f32 to vector<8x256xf32>
    %8 = arith.maximumf %6, %7 : vector<8x256xf32>
    %9 = arith.truncf %8 : vector<8x256xf32> to vector<8x256xbf16>
    %c0_6 = arith.constant 0 : index
    %c0_7 = arith.constant 0 : index
    %10 = vector.load %arg4[%c0_6, %c0_7] : memref<256x256xbf16, #tpu.memory_space<vmem>>, vector<256x256xbf16>
    %cst_8 = arith.constant dense<0.000000e+00> : vector<8x256xf32>
    %11 = tpu.matmul %9, %10, %cst_8 {dimension_numbers = #tpu.dot_dimension_numbers<[1], [0], [0], [1], [0, 0, 1, 1], [], []>} : vector<8x256xbf16>, vector<256x256xbf16>, vector<8x256xf32> -> vector<8x256xf32>
    %c0_9 = arith.constant 0 : index
    %c0_10 = arith.constant 0 : index
    %12 = vector.load %arg5[%c0_9, %c0_10] : memref<1x256xf32, #tpu.memory_space<vmem>>, vector<1x256xf32>
    %13 = vector.broadcast %12 : vector<1x256xf32> to vector<8x256xf32>
    %14 = arith.addf %11, %13 : vector<8x256xf32>
    %cst_11 = arith.constant 0.000000e+00 : f32
    %15 = vector.broadcast %cst_11 : f32 to vector<8x256xf32>
    %16 = arith.maximumf %14, %15 : vector<8x256xf32>
    %17 = arith.truncf %16 : vector<8x256xf32> to vector<8x256xbf16>
    %c0_12 = arith.constant 0 : index
    %c0_13 = arith.constant 0 : index
    %18 = vector.load %arg6[%c0_12, %c0_13] : memref<256x128xbf16, #tpu.memory_space<vmem>>, vector<256x128xbf16>
    %cst_14 = arith.constant dense<0.000000e+00> : vector<8x128xf32>
    %19 = tpu.matmul %17, %18, %cst_14 {dimension_numbers = #tpu.dot_dimension_numbers<[1], [0], [0], [1], [0, 0, 1, 1], [], []>} : vector<8x256xbf16>, vector<256x128xbf16>, vector<8x128xf32> -> vector<8x128xf32>
    %c0_15 = arith.constant 0 : index
    %c0_16 = arith.constant 0 : index
    %20 = vector.load %arg7[%c0_15, %c0_16] : memref<1x128xf32, #tpu.memory_space<vmem>>, vector<1x128xf32>
    %21 = vector.broadcast %20 : vector<1x128xf32> to vector<8x128xf32>
    %22 = arith.addf %19, %21 : vector<8x128xf32>
    %c0_17 = arith.constant 0 : index
    %c0_18 = arith.constant 0 : index
    %23 = vector.load %arg8[%c0_17, %c0_18] : memref<8x128xf32, #tpu.memory_space<vmem>>, vector<8x128xf32>
    tpu.vector_store %arg8[%c0_17, %c0_18], %22 {strides = array<i32>} : memref<8x128xf32, #tpu.memory_space<vmem>>, vector<8x128xf32>,
    return
  }
  func.func @transform_0(%arg0: i32) -> (i32, i32) {
    %c0_i32 = arith.constant 0 : i32
    %c0_i32_0 = arith.constant 0 : i32
    return %arg0, %c0_i32 : i32, i32
  }
  func.func @transform_1(%arg0: i32) -> (i32, i32) {
    %c0_i32 = arith.constant 0 : i32
    %c0_i32_0 = arith.constant 0 : i32
    %c0_i32_1 = arith.constant 0 : i32
    return %c0_i32, %c0_i32_0 : i32, i32
  }
  func.func @transform_2(%arg0: i32) -> (i32, i32) {
    %c0_i32 = arith.constant 0 : i32
    %c0_i32_0 = arith.constant 0 : i32
    %c0_i32_1 = arith.constant 0 : i32
    return %c0_i32, %c0_i32_0 : i32, i32
  }
  func.func @transform_3(%arg0: i32) -> (i32, i32) {
    %c0_i32 = arith.constant 0 : i32
    %c0_i32_0 = arith.constant 0 : i32
    %c0_i32_1 = arith.constant 0 : i32
    return %c0_i32, %c0_i32_0 : i32, i32
  }
  func.func @transform_4(%arg0: i32) -> (i32, i32) {
    %c0_i32 = arith.constant 0 : i32
    %c0_i32_0 = arith.constant 0 : i32
    %c0_i32_1 = arith.constant 0 : i32
    return %c0_i32, %c0_i32_0 : i32, i32
  }
  func.func @transform_5(%arg0: i32) -> (i32, i32) {
    %c0_i32 = arith.constant 0 : i32
    %c0_i32_0 = arith.constant 0 : i32
    %c0_i32_1 = arith.constant 0 : i32
    return %c0_i32, %c0_i32_0 : i32, i32
  }
  func.func @transform_6(%arg0: i32) -> (i32, i32) {
    %c0_i32 = arith.constant 0 : i32
    %c0_i32_0 = arith.constant 0 : i32
    %c0_i32_1 = arith.constant 0 : i32
    return %c0_i32, %c0_i32_0 : i32, i32
  }
  func.func @transform_7(%arg0: i32) -> (i32, i32) {
    %c0_i32 = arith.constant 0 : i32
    %c0_i32_0 = arith.constant 0 : i32
    return %arg0, %c0_i32 : i32, i32
  }
}

</mosaic_0001>

<bundles_post_ra>
// kernel: mlp_forward.1
= control target key start
LH: loop header
LB: loop body
LE: loop exit
PB: predicated region body
PF: predicated region fallthrough
CT: control target
= control target key end

     0   :  { %12 = vsyncpa [#allocation3], 0  ;;  %s1585_s0 = inlined_call_operand.hbm [shape: f32[16,16], index: 0, kind: input, shape index: {}]   ;;  %s1586_s1 = inlined_call_operand.hbm [shape: bf16[16,256], index: 1, kind: input, shape index: {}]   ;;  %s1587_s2 = inlined_call_operand.vmem [shape: f32[1,256], index: 2, kind: input, shape index: {}]   ;;  %s1588_s3 = inlined_call_operand.hbm [shape: bf16[256,256], index: 3, kind: input, shape index: {}]   ;;  %s1589_s4 = inlined_call_operand.vmem [shape: f32[1,256], index: 4, kind: input, shape index: {}]   ;;  %s1590_s5 = inlined_call_operand.hbm [shape: bf16[256,128], index: 5, kind: input, shape index: {}]   ;;  %s1591_s6 = inlined_call_operand.vmem [shape: f32[1,128], index: 6, kind: input, shape index: {}]   ;;  %s1592_s7 = inlined_call_operand.vmem [shape: f32[16,128], index: 7, kind: output, shape index: {}]  }
   0x1   :  { %14 = vsyncpa [#allocation3 + $0x1], 0 }
   0x2   :  { %15 = vsyncpa [#allocation5], 0 }
   0x3   :  { %16 = vsyncpa [#allocation8], 0  ;;  %s1372_s24 = smov 0   ;;  %s1374_s25 = smov 0  }
   0x4   :  { %s1376_s26 = smov 0   ;;  %s1378_s27 = smov 0  }
   0x5 LB: > { %s1391_s28 = sadd.s32 4294967295, %s1321_s27   ;;  %p42_p0 = scmp.ne.s32.totalorder %s1313_s25, %s1309_s24  ;;  %s1321_s27 = sphi %s1378_s27, %s1610_s27   ;;  %s1317_s26 = sphi %s1376_s26, %s1609_s26   ;;  %s1313_s25 = sphi %s1374_s25, %s1608_s25   ;;  %s1309_s24 = sphi %s1372_s24, %s1607_s24  }
   0x6   : > { %p1593_p1 = scmp.eq.s32.totalorder %s1391_s28, 0  ;;  %p934_p2 = scmp.ge.s32.totalorder %s1321_s27, 1 }
   0x7   : > { %p205_p3 = scmp.lt.s32.totalorder %s1321_s27, 3  ;;  %s1323_s8 = smov [#allocation4]  }
   0x8   : > { %p1399_p4 = por %p1593_p1, %p42_p0  ;;  %s217_s9 = sshll.u32 %s1323_s8, 4  ;;  %s1407_s9 = int_to_ptr.vmem [resolvable:$true] %s217_s9 }
   0x9   : > { %p1403_p5 = pnand %p934_p2, %p205_p3  ;;  %s1324_s11 = smov [#allocation6]  }
   0xa   : > { %s1596_s29 = scalar_select %p1399_p4, 1, 0 }
   0xb   : > { %s1597_s30 = scalar_select %p1403_p5, 1, 0 }
   0xc   : > { %p1037_p6 = pneg %p1403_p5  ;;  %s233_s12 = sshll.u32 %s1324_s11, 4  ;;  %s1417_s12 = int_to_ptr.vmem [resolvable:$true] %s233_s12 }
   0xd   : > { %s1325_s13 = smov [#allocation7]   ;;  %s1165_s17 = scalar_lea.hbm %s1586_s1, 256 }
   0xe   : > { %p1413_p7 = pnand %p1037_p6, %p1593_p1  ;;  %s1419_s14 = sshll.u32 %s1325_s13, 4  ;;  %s250_s14 = int_to_ptr.vmem [resolvable:$true] %s1419_s14 }
   0xf   : > { %p1166_p8 = scmp.ne.s32.totalorder %s1586_s1, %s1165_s17  ;;  %p1172_p12 = scmp.lt.u32.totalorder %s1165_s17, %s1586_s1 }
  0x10   : > { %p1429_p9 = pneg %p1413_p7 }
  0x12   : > { %p1168_p10 = pnand %p1429_p9, %p1166_p8 }
  0x14   : > { %p1169_p11 = pneg %p1168_p10 }
  0x16   : > { %p1174_p13 = pnand %p1172_p12, %p1169_p11 }
  0x18   : > { %1177 = shalt.err (!%p1174_p13)
}
  0x19   : > { %s1178_s23 = scalar_lea.vmem %s1407_s9, 256  ;;  %p1186_p6 = scmp.lt.s32.totalorder %s1407_s9, %s1407_s9 }
  0x1a   : > { %p1179_p0 = scmp.ne.s32.totalorder %s1407_s9, %s1178_s23  ;;  %p1187_p1 = scmp.lt.s32.totalorder %s1178_s23, %s1178_s23 }
  0x1c   : > { %p1181_p2 = pnand %p1179_p0, %p1429_p9  ;;  %p1188_p8 = por %p1187_p1, %p1186_p6 }
  0x1e   : > { %p1182_p3 = pneg %p1181_p2 }
  0x20   : > { %p1189_p10 = pnand %p1188_p8, %p1182_p3 }
  0x22   : > { %1192 = shalt.err (!%p1189_p10)
}
  0x23   : > { %s1326_s24 = smov 128   ;;  %s1327_s8 = smov 8  }
  0x24   : > { %1040 = dma.hbm_to_vmem [thread:$0]  (!%p1413_p7), %s1586_s1, 256, %s1407_s9, [#allocation5], %s1326_s24, %s1326_s24, %s1327_s8  }
  0x25   : > { %s1193_s17 = scalar_lea.hbm %s1588_s3, 4096 }
  0x26   : > { %p1194_p1 = scmp.ne.s32.totalorder %s1588_s3, %s1193_s17  ;;  %p1200_p13 = scmp.lt.u32.totalorder %s1193_s17, %s1588_s3 }
  0x28   : > { %p1196_p11 = pnand %p1194_p1, %p1429_p9 }
  0x2a   : > { %p1197_p12 = pneg %p1196_p11 }
  0x2c   : > { %p1202_p0 = pnand %p1200_p13, %p1197_p12 }
  0x2e   : > { %1205 = shalt.err (!%p1202_p0)
}
  0x2f   : > { %s1206_s9 = scalar_lea.vmem %s1417_s12, 4096  ;;  %p1214_p8 = scmp.lt.s32.totalorder %s1417_s12, %s1417_s12 }
  0x30   : > { %p1207_p2 = scmp.ne.s32.totalorder %s1417_s12, %s1206_s9  ;;  %p1215_p10 = scmp.lt.s32.totalorder %s1206_s9, %s1206_s9 }
  0x32   : > { %p1209_p3 = pnand %p1207_p2, %p1429_p9  ;;  %p1216_p1 = por %p1215_p10, %p1214_p8 }
  0x34   : > { %p1210_p6 = pneg %p1209_p3 }
  0x36   : > { %p1217_p11 = pnand %p1216_p1, %p1210_p6 }
  0x38   : > { %1220 = shalt.err (!%p1217_p11)
}
  0x39   : > { %1043 = dma.hbm_to_vmem [thread:$0]  (!%p1413_p7), %s1588_s3, 4096, %s1417_s12, [#allocation5], %s1326_s24, %s1326_s24, %s1327_s8  }
  0x3a   : > { %s1221_s16 = scalar_lea.hbm %s1590_s5, 2048 }
  0x3b   : > { %p1222_p12 = scmp.ne.s32.totalorder %s1590_s5, %s1221_s16  ;;  %p1228_p2 = scmp.lt.u32.totalorder %s1221_s16, %s1590_s5 }
  0x3d   : > { %p1224_p13 = pnand %p1222_p12, %p1429_p9 }
  0x3f   : > { %p1225_p0 = pneg %p1224_p13 }
  0x41   : > { %p1230_p3 = pnand %p1228_p2, %p1225_p0 }
  0x43   : > { %1233 = shalt.err (!%p1230_p3)
}
  0x44   : > { %s1234_s22 = scalar_lea.vmem %s250_s14, 2048  ;;  %p1242_p1 = scmp.lt.s32.totalorder %s250_s14, %s250_s14 }
  0x45   : > { %p1235_p6 = scmp.ne.s32.totalorder %s250_s14, %s1234_s22  ;;  %p1243_p11 = scmp.lt.s32.totalorder %s1234_s22, %s1234_s22 }
  0x47   : > { %p1237_p8 = pnand %p1235_p6, %p1429_p9  ;;  %p1244_p4 = por %p1243_p11, %p1242_p1 }
  0x49   : > { %p1238_p10 = pneg %p1237_p8 }
  0x4b   : > { %p1245_p5 = pnand %p1244_p4, %p1238_p10 }
  0x4d   : > { %1248 = shalt.err (!%p1245_p5)
}
  0x4e   : > { %s1328_s12 = smov 64   ;;  %s1329_s20 = smov 4  }
  0x4f   : > { %1046 = dma.hbm_to_vmem [thread:$0]  (!%p1413_p7), %s1590_s5, 2048, %s250_s14, [#allocation8], %s1328_s12, %s1328_s12, %s1329_s20  }
  0x50   : > { %s1493_s9 = sadd.s32 1, %s1321_s27   ;;  %s29_s11 = sadd.s32 1, %s1317_s26 }
  0x51   : > { %s26_s23 = ssub.s32 %s1321_s27, %s1493_s9  ;;  %p36_p5 = scmp.ne.s32.totalorder %s1317_s26, %s1313_s25 }
  0x52   : > { %p27_p4 = scmp.eq.s32.totalorder %s26_s23, 0  ;;  %p37_p9 = scmp.eq.s32.totalorder %s1321_s27, 0 }
  0x53   : > { %p1054_p12 = scmp.lt.s32.totalorder %s1321_s27, 2  ;;  %s266_s15 = sand.u32 1, %s1317_s26  }
  0x54   : > { %s1503_s13 = scalar_select %p27_p4, %s1317_s26, %s29_s11  }
  0x55   : > { %p38_p13 = por %p37_p9, %p36_p5  ;;  %s939_s16 = sshll.u32 %s266_s15, 3 }
  0x56   : > { %s940_s17 = sshll.u32 %s1321_s27, 7  ;;  %s270_s14 = scalar_lea.vmem [#allocation2], %s939_s16 }
  0x57   : > { %s1510_s19 = scalar_lea.hbm %s1585_s0, %s940_s17  ;;  %s277_s21 = sshll.u32 %s270_s14, 4  ;;  %s1512_s21 = int_to_ptr.vmem [resolvable:$true] %s277_s21 }
  0x58   : > { %p1514_p7 = pnand %p1054_p12, %p38_p13  ;;  %s267_s27 = scalar_lea.sflag [#allocation3], %s266_s15 }
  0x59   : > { %s1249_s12 = scalar_lea.hbm %s1510_s19, 128  ;;  %s1254_s8 = scalar_lea.hbm %s1585_s0, 256 }
  0x5a   : > { %p1250_p0 = scmp.ne.s32.totalorder %s1510_s19, %s1249_s12  ;;  %p1251_p2 = pneg %p1514_p7 }
  0x5b   : > { %p1255_p8 = scmp.lt.u32.totalorder %s1510_s19, %s1585_s0  ;;  %p1256_p10 = scmp.lt.u32.totalorder %s1254_s8, %s1249_s12 }
  0x5c   : > { %p1252_p3 = pnand %p1251_p2, %p1250_p0  ;;  %p1258_p11 = scmp.lt.u32.totalorder %s1249_s12, %s1510_s19 }
  0x5d   : > { %p1257_p1 = por %p1256_p10, %p1255_p8 }
  0x5e   : > { %p1253_p6 = pneg %p1252_p3 }
  0x5f   : > { %p1259_p4 = por %p1258_p11, %p1257_p1 }
  0x61   : > { %p1260_p5 = pnand %p1259_p4, %p1253_p6 }
  0x63   : > { %1263 = shalt.err (!%p1260_p5)
}
  0x64   : > { %s1264_s15 = scalar_lea.vmem %s1512_s21, 128  ;;  %s1330_s16 = smov [#allocation2]  }
  0x65   : > { %p1265_p9 = scmp.ne.s32.totalorder %s1512_s21, %s1264_s15  ;;  %s1269_s17 = sshll.u32 %s1330_s16, 4  ;;  %s1270_s17 = int_to_ptr.vmem [resolvable:$false] %s1269_s17 }
  0x66   : > { %s1271_s10 = scalar_lea.vmem %s1270_s17, 256  ;;  %p1272_p0 = scmp.lt.s32.totalorder %s1512_s21, %s1270_s17 }
  0x67   : > { %p1267_p12 = pnand %p1265_p9, %p1251_p2  ;;  %p1273_p3 = scmp.lt.s32.totalorder %s1271_s10, %s1264_s15 }
  0x69   : > { %p1268_p13 = pneg %p1267_p12  ;;  %p1274_p8 = por %p1273_p3, %p1272_p0 }
  0x6b   : > { %p1275_p10 = pnand %p1274_p8, %p1268_p13 }
  0x6d   : > { %1278 = shalt.err (!%p1275_p10)
}
  0x6e   : > { %1050 = dma.hbm_to_vmem [thread:$0]  (!%p1514_p7), %s1510_s19, 128, %s1512_s21, %s267_s27  }
  0x6f   : > { %p1601_p6 = scmp.ne.s32.totalorder %s1597_s30, 0 }
  0x70   : > { %s288_s18 = sand.u32 (!%p1601_p6), 1, %s1313_s25   ;;  %p1602_p2 = scmp.ne.s32.totalorder (!%p1601_p6), %s1596_s29, 0 }
  0x71   : > { %286 = sbr.rel (%p1601_p6) target bundleno = 790 (0x316), region = 48  ;;  %s942_s14 = sshll.u32 (!%p1601_p6), %s288_s18, 3 }
  0x72   : > { %s289_s12 = scalar_lea.sflag (!%p1601_p6), [#allocation3], %s288_s18  ;;  %s292_s20 = scalar_lea.vmem (!%p1601_p6), [#allocation2], %s942_s14 }
  0x78   : > { %1296 = dma.done.wait (%p1602_p2), %s289_s12, 128  }
  0x79   : > { %1298 = vsyncadd (%p1602_p2), %s289_s12, 4294967168  ;;  %p1603_p1 = scmp.eq.s32.totalorder %s1391_s28, 0 }
  0x7b   : > { %1300 = dma.done.wait (%p1603_p1), [#allocation5], 4352   ;;  %p1604_p11 = pmov %p1603_p1 }
  0x7c   : > { %p1605_p7 = pmov %p1603_p1 }
  0x7d   : > { %1302 = vsyncadd (%p1604_p11), [#allocation5], 4294962944 }
  0x7e   : > { %1304 = dma.done.wait (%p1605_p7), [#allocation8], 2048   ;;  %p1606_p4 = pmov %p1603_p1 }
  0x7f   : > { %v1331_v0 = vmov 0   ;;  %v1098_v1 = vld [vmem:[#allocation4 + $0x4] ss:$8 sps:$4 sm:$0xff]   ;;  %v1100_v2 = vld [vmem:[#allocation4] ss:$8 sps:$4 sm:$0xff]   ;;  %v339_v3 = vld [vmem:[%s292_s20] sm:$0xff]  ;;  %v345_v49 = vlaneseq }
  0x80   : > { %1306 = vsyncadd (%p1606_p4), [#allocation8], 4294965248  ;;  %401 = vmatprep.mubr.bf16.mxu0 %v1331_v0  ;;  %369 = vmatprep.subr.bf16.mxu0 %v1098_v1  ;;  %v340_v4 = vpack.c.bf16 %v339_v3, %v339_v3  ;;  %v1101_v5 = vld [vmem:[#allocation6 + $0x4] ss:$8 sps:$4 sm:$0xff]   ;;  %v1103_v6 = vld [vmem:[#allocation6] ss:$8 sps:$4 sm:$0xff]  }
  0x81   : > { %370 = vmatpush1.bf16.msra.mxu0 %v1100_v2  ;;  %vm365_vm0 = vcmask 130048   ;;  %v1104_v7 = vld [vmem:[#allocation6 + $0x14] ss:$8 sps:$4 sm:$0xff]   ;;  %618 = vmatprep.subr.bf16.mxu1 %v1101_v5  ;;  %v1106_v8 = vld [vmem:[#allocation6 + $0x10] ss:$8 sps:$4 sm:$0xff]   ;;  %v1149_v37 = vld [vmem:[#allocation7 + $0x40] sm:$0xff]  }
  0x82   : > { %619 = vmatpush1.bf16.msra.mxu1 %v1103_v6  ;;  %v1107_v9 = vld [vmem:[#allocation6 + $0x24] ss:$8 sps:$4 sm:$0xff]   ;;  %v1109_v10 = vld [vmem:[#allocation6 + $0x20] ss:$8 sps:$4 sm:$0xff]   ;;  %v1110_v11 = vld [vmem:[#allocation6 + $0x34] ss:$8 sps:$4 sm:$0xff]   ;;  %1001 = vmatprep.subr.bf16.mxu0 %v1149_v37 }
  0x83   : > { %620 = vmatprep.subr.bf16.mxu1 %v1104_v7  ;;  %v1112_v12 = vld [vmem:[#allocation6 + $0x30] ss:$8 sps:$4 sm:$0xff]   ;;  %v1113_v13 = vld [vmem:[#allocation6 + $0x44] ss:$8 sps:$4 sm:$0xff]   ;;  %v1115_v14 = vld [vmem:[#allocation6 + $0x40] ss:$8 sps:$4 sm:$0xff]  }
  0x84   : > { %949 = vmatmul.mubr.msk.bf16.vlgmr.msra.gmra.mrb[0].mxu0 %vm365_vm0, %v340_v4  ;;  %v1116_v15 = vld [vmem:[#allocation6 + $0x54] ss:$8 sps:$4 sm:$0xff]   ;;  %v1118_v16 = vld [vmem:[#allocation6 + $0x50] ss:$8 sps:$4 sm:$0xff]   ;;  %v1119_v17 = vld [vmem:[#allocation6 + $0x64] ss:$8 sps:$4 sm:$0xff]  }
  0x85   : > { %v1121_v18 = vld [vmem:[#allocation6 + $0x60] ss:$8 sps:$4 sm:$0xff]   ;;  %v1122_v19 = vld [vmem:[#allocation6 + $0x74] ss:$8 sps:$4 sm:$0xff]   ;;  %v1124_v20 = vld [vmem:[#allocation6 + $0x70] ss:$8 sps:$4 sm:$0xff]  }
  0x86   : > { %621 = vmatpush1.bf16.msra.mxu1 %v1106_v8  ;;  %v1125_v21 = vld [vmem:[#allocation6 + $0x84] ss:$8 sps:$4 sm:$0xff]   ;;  %v1127_v22 = vld [vmem:[#allocation6 + $0x80] ss:$8 sps:$4 sm:$0xff]   ;;  %v1128_v23 = vld [vmem:[#allocation6 + $0x94] ss:$8 sps:$4 sm:$0xff]  }
  0x87   : > { %622 = vmatprep.subr.bf16.mxu1 %v1107_v9  ;;  %v1130_v24 = vld [vmem:[#allocation6 + $0x90] ss:$8 sps:$4 sm:$0xff]   ;;  %v1131_v25 = vld [vmem:[#allocation6 + $0xa4] ss:$8 sps:$4 sm:$0xff]   ;;  %v1133_v26 = vld [vmem:[#allocation6 + $0xa0] ss:$8 sps:$4 sm:$0xff]  }
  0x88   : > { %v1134_v27 = vld [vmem:[#allocation6 + $0xb4] ss:$8 sps:$4 sm:$0xff]   ;;  %v1136_v28 = vld [vmem:[#allocation6 + $0xb0] ss:$8 sps:$4 sm:$0xff]   ;;  %v1137_v29 = vld [vmem:[#allocation6 + $0xc4] ss:$8 sps:$4 sm:$0xff]  }
  0x89   : > { %v1139_v30 = vld [vmem:[#allocation6 + $0xc0] ss:$8 sps:$4 sm:$0xff]   ;;  %v1140_v31 = vld [vmem:[#allocation6 + $0xd4] ss:$8 sps:$4 sm:$0xff]   ;;  %v1142_v32 = vld [vmem:[#allocation6 + $0xd0] ss:$8 sps:$4 sm:$0xff]  }
  0x8a   : > { %623 = vmatpush1.bf16.msra.mxu1 %v1109_v10  ;;  %v1143_v33 = vld [vmem:[#allocation6 + $0xe4] ss:$8 sps:$4 sm:$0xff]   ;;  %v1145_v34 = vld [vmem:[#allocation6 + $0xe0] ss:$8 sps:$4 sm:$0xff]   ;;  %v1146_v35 = vld [vmem:[#allocation6 + $0xf4] ss:$8 sps:$4 sm:$0xff]  }
  0x8b   : > { %624 = vmatprep.subr.bf16.mxu1 %v1110_v11  ;;  %v1148_v36 = vld [vmem:[#allocation6 + $0xf0] ss:$8 sps:$4 sm:$0xff]   ;;  %v1150_v38 = vld [vmem:[#allocation7] sm:$0xff]   ;;  %v1151_v39 = vld [vmem:[#allocation7 + $0x48] sm:$0xff]   ;;  %v346_v50 = vshrl.u32 %v345_v49, 7  ;;  %p334_p5 = scmp.lt.s32.totalorder %s1391_s28, 1 }
  0x8c   : > { %1002 = vmatpush3.bf16.msra.mxu0 %v1150_v38  ;;  %v1152_v40 = vld [vmem:[#allocation7 + $0x8] sm:$0xff]   ;;  %v1153_v41 = vld [vmem:[#allocation7 + $0x50] sm:$0xff]   ;;  %v1155_v43 = vld [vmem:[#allocation7 + $0x58] sm:$0xff]  }
  0x8d   : > { %1003 = vmatprep.subr.bf16.mxu0 %v1151_v39  ;;  %v1154_v42 = vld [vmem:[#allocation7 + $0x10] sm:$0xff]   ;;  %v1156_v44 = vld [vmem:[#allocation7 + $0x18] sm:$0xff]   ;;  %v1157_v45 = vld [vmem:[#allocation7 + $0x60] sm:$0xff]   ;;  %v347_v51 = vsub.s32 0, %v346_v50  ;;  %v351_v53 = vsub.s32 1, %v346_v50  ;;  %s1612_s28 = smov (!%p334_p5, %s1391_s28), 1 }
  0x8e   : > { %625 = vmatpush1.bf16.msra.mxu1 %v1112_v12  ;;  %v1158_v46 = vld [vmem:[#allocation7 + $0x20] sm:$0xff]   ;;  %v1159_v47 = vld [vmem:[#allocation7 + $0x68] sm:$0xff]   ;;  %v1161_v2 = vld [vmem:[#allocation7 + $0x70] sm:$0xff]   ;;  %s946_s22 = sshll.u32 %s1612_s28, 3 }
  0x8f   : > { %626 = vmatprep.subr.bf16.mxu1 %v1113_v13  ;;  %v1160_v48 = vld [vmem:[#allocation7 + $0x28] sm:$0xff]   ;;  %v343_v52 = vld [vmem:[%s1587_s2] sm:$0x3]  ;;  %v1162_v3 = vld [vmem:[#allocation7 + $0x30] sm:$0xff]   ;;  %s337_s11 = scalar_lea.vmem %s1592_s7, %s946_s22 }
  0x90   : > { %1004 = vmatpush3.bf16.msra.mxu0 %v1152_v40  ;;  %v348_v54 = vrot.slane %v343_v52, %v347_v51  ;;  %v352_v55 = vrot.slane %v343_v52, %v351_v53  ;;  %v1163_v4 = vld [vmem:[#allocation7 + $0x78] sm:$0xff]   ;;  %v446_v6 = vld [vmem:[%s1589_s4] sm:$0x3] }
  0x91   : > { %1005 = vmatprep.subr.bf16.mxu0 %v1153_v41  ;;  %v1164_v5 = vld [vmem:[#allocation7 + $0x38] sm:$0xff]   ;;  %v451_v7 = vrot.slane %v446_v6, %v347_v51  ;;  %v455_v8 = vrot.slane %v446_v6, %v351_v53 }
  0x92   : > { %627 = vmatpush1.bf16.msra.mxu1 %v1115_v14 }
  0x93   : > { %628 = vmatprep.subr.bf16.mxu1 %v1116_v15 }
  0x94   : > { %1006 = vmatpush3.bf16.msra.mxu0 %v1154_v42 }
  0x95   : > { %1007 = vmatprep.subr.bf16.mxu0 %v1155_v43 }
  0x96   : > { %629 = vmatpush1.bf16.msra.mxu1 %v1118_v16 }
  0x97   : > { %630 = vmatprep.subr.bf16.mxu1 %v1119_v17 }
  0x98   : > { %1008 = vmatpush3.bf16.msra.mxu0 %v1156_v44 }
  0x99   : > { %1009 = vmatprep.subr.bf16.mxu0 %v1157_v45 }
  0x9a   : > { %631 = vmatpush1.bf16.msra.mxu1 %v1121_v18 }
  0x9b   : > { %632 = vmatprep.subr.bf16.mxu1 %v1122_v19 }
  0x9c   : > { %1010 = vmatpush3.bf16.msra.mxu0 %v1158_v46 }
  0x9d   : > { %1011 = vmatprep.subr.bf16.mxu0 %v1159_v47 }
  0x9e   : > { %633 = vmatpush1.bf16.msra.mxu1 %v1124_v20  ;;  %v982_v20 = vld [vmem:[%s1591_s6] ss:$0 sm:$0xff] }
  0x9f   : > { %634 = vmatprep.subr.bf16.mxu1 %v1125_v21 }
  0xa0   : > { %1012 = vmatpush3.bf16.msra.mxu0 %v1160_v48 }
  0xa1   : > { %1013 = vmatprep.subr.bf16.mxu0 %v1161_v2 }
  0xa2   : > { %635 = vmatpush1.bf16.msra.mxu1 %v1127_v22 }
  0xa3   : > { %636 = vmatprep.subr.bf16.mxu1 %v1128_v23 }
  0xa4   : > { %1014 = vmatpush3.bf16.msra.mxu0 %v1162_v3 }
  0xa5   : > { %1015 = vmatprep.subr.bf16.mxu0 %v1163_v4 }
  0xa6   : > { %637 = vmatpush1.bf16.msra.mxu1 %v1130_v24 }
  0xa7   : > { %638 = vmatprep.subr.bf16.mxu1 %v1131_v25 }
  0xa8   : > { %1016 = vmatpush3.bf16.msra.mxu0 %v1164_v5 }
  0xaa   : > { %639 = vmatpush1.bf16.msra.mxu1 %v1133_v26 }
  0xab   : > { %640 = vmatprep.subr.bf16.mxu1 %v1134_v27 }
  0xae   : > { %641 = vmatpush1.bf16.msra.mxu1 %v1136_v28 }
  0xaf   : > { %642 = vmatprep.subr.bf16.mxu1 %v1137_v29 }
  0xb2   : > { %643 = vmatpush1.bf16.msra.mxu1 %v1139_v30 }
  0xb3   : > { %644 = vmatprep.subr.bf16.mxu1 %v1140_v31 }
  0xb6   : > { %645 = vmatpush1.bf16.msra.mxu1 %v1142_v32 }
  0xb7   : > { %646 = vmatprep.subr.bf16.mxu1 %v1143_v33 }
  0xba   : > { %647 = vmatpush1.bf16.msra.mxu1 %v1145_v34 }
  0xbb   : > { %648 = vmatprep.subr.bf16.mxu1 %v1146_v35 }
  0xbe   : > { %649 = vmatpush1.bf16.msra.mxu1 %v1148_v36 }
 0x157   : > { %v403_v56 = vpop.f32.mrb[0].mxu0 }
 0x158   : > { %v404_v57 = vadd.f32 %v403_v56, %v348_v54  ;;  %v405_v58 = vpop.f32.mrb[1].mxu0 }
 0x159   : > { %v406_v59 = vadd.f32 %v405_v58, %v352_v55  ;;  %v407_v60 = vpop.f32.mrb[2].mxu0 }
 0x15a   : > { %v410_v61 = vmax.f32 %v404_v57, 0.0  ;;  %v408_v62 = vpop.f32.mrb[3].mxu0 }
 0x15b   : > { %v411_v63 = vmax.f32 %v406_v59, 0.0 }
 0x15c   : > { %v412_v1 = vpack.c.bf16 %v410_v61, %v410_v61 }
 0x15d   : > { %v413_v0 = vpack.c.bf16 %v411_v63, %v411_v63 }
 0x15f   : > { %650 = vmatprep.mubr.bf16.mxu1 %v413_v0 }
 0x160   : > { %651 = vmatmul.mubr.bf16.vlgmr.msra.gmra.mrb[0].mxu1 %v412_v1 }
 0x233   : > { %v652_v9 = vpop.f32.mrb[0].mxu1 }
 0x234   : > { %v653_v10 = vadd.f32 %v652_v9, %v451_v7  ;;  %v654_v11 = vpop.f32.mrb[1].mxu1 }
 0x235   : > { %v655_v12 = vadd.f32 %v654_v11, %v455_v8  ;;  %v656_v13 = vpop.f32.mrb[2].mxu1 }
 0x236   : > { %v659_v14 = vmax.f32 %v653_v10, 0.0  ;;  %v657_v15 = vpop.f32.mrb[3].mxu1 }
 0x237   : > { %v660_v16 = vmax.f32 %v655_v12, 0.0 }
 0x238   : > { %v661_v18 = vpack.c.bf16 %v659_v14, %v659_v14 }
 0x239   : > { %v662_v17 = vpack.c.bf16 %v660_v16, %v660_v16 }
 0x23b   : > { %830 = vmatprep.mubr.bf16.mxu0 %v662_v17 }
 0x23c   : > { %831 = vmatmul.mubr.bf16.vlgmr.msra.gmra.mrb[4].mxu0 %v661_v18 }
 0x30f   : > { %v1017_v19 = vpop.f32.mrb[4].mxu0 }
 0x310   : > { %v1018_v21 = vpop.f32.mrb[5].mxu0 }
 0x311   : > { %v1019_v22 = vadd.f32 %v1018_v21, %v1017_v19  ;;  %v1020_v23 = vpop.f32.mrb[6].mxu0 }
 0x312   : > { %v1021_v24 = vpop.f32.mrb[7].mxu0 }
 0x313   : > { %v833_v25 = vadd.f32 %v1019_v22, %v982_v20 }
 0x315   : > { %838 = vst [vmem:[%s337_s11] sm:$0xff] %v833_v25 }
 0x316 PF: > { %p19_p9 = scmp.ge.s32.totalorder %s1493_s9, 4   ;;  %s1607_s24 = smov %s1313_s25 }
 0x317   : > { %s1608_s25 = smov %s1317_s26  ;;  %s1609_s26 = smov %s1503_s13 }
 0x318   : > { %s1610_s27 = smov %s1493_s9  ;;  %21 = sbr.rel (!%p19_p9) target bundleno = 5 (0x5), region = 100 }
 0x31f   :  { %858 = vsyncpa [#allocation3], 1 }
 0x320   :  { %860 = vsyncpa [#allocation3 + $0x1], 1 }
 0x321   :  { %861 = vsyncpa [#allocation5], 1 }
 0x322   :  { %862 = vsyncpa [#allocation8], 1 }

</bundles_post_ra>
